<compile_context>
chip_gen: v7x
topology: tpu7x:2x2x1
jax: 0.10.0
libtpu: 0.0.40
codegen_flags: <defaults>
</compile_context>

<pallas_src>
import functools

import jax
import jax.numpy as jnp
from jax import lax
from jax.experimental import pallas as pl
from jax.experimental.pallas import tpu as pltpu


def gram_matrix_ref(x):
    """Plain-JAX gram matrix (used only at module-init time for the target)."""
    b, c, h, w = x.shape
    feats = x.reshape(b * c, h * w).astype(jnp.float32)
    g = feats @ feats.T
    return g / (b * h * w * c)


def _round_up(x, m):
    return ((x + m - 1) // m) * m


# Total pipelined VMEM budget: safe on v7x (64 MiB physical) with headroom for
# compiler-internal scratch; comfortably inside v5e/v6e's 128 MiB.
_VMEM_BUDGET = 48 * 1024 * 1024


def _choose_tk(hw_kept, n, itemsize, max_tk=None):
    """Pick the K-tile: as large as the VMEM budget allows (2 double-buffered
    (N, tk) input tiles + resident (N, N) f32 output), preferring an exact
    multiple-of-128 divisor of hw_kept so no padded tail tile is streamed."""
    resident = 2 * n * n * 4                                  # output gram
    tk_max = (_VMEM_BUDGET - resident) // (2 * n * itemsize)  # 2 = dbl buffer
    tk_max = (tk_max // 128) * 128
    tk_max = max(128, min(tk_max, _round_up(hw_kept, 128)))
    if max_tk is not None:                                    # test override
        tk_max = max(128, min(tk_max, (max_tk // 128) * 128))
    if hw_kept % 128 == 0:
        tk = tk_max
        while tk >= 128:
            if hw_kept % tk == 0:
                return tk
            tk -= 128
    return tk_max


def _gram_kernel(x_ref, g_ref, *, inv_norm):
    """One K-tile of the streamed gram accumulation.

    x_ref: (N, tk) tile of the kept-half features (native or bf16 dtype).
    g_ref: (N, N) f32 partial gram for this parallel slice.  Its block index
           is constant over the reduction axis, so it stays resident in VMEM
           and doubles as the accumulator (no scratch needed).
    """
    k = pl.program_id(1)

    @pl.when(k == 0)
    def _():
        g_ref[...] = jnp.zeros_like(g_ref)

    x = x_ref[...]
    g_ref[...] += lax.dot_general(
        x, x,
        dimension_numbers=(((1,), (1,)), ((), ())),   # x @ x.T, transpose-free
        preferred_element_type=jnp.float32,
    )

    @pl.when(k == pl.num_programs(1) - 1)
    def _():
        g_ref[...] = g_ref[...] * inv_norm            # static 1/(B*H*W*C)


@functools.partial(jax.jit, static_argnames=("mode", "cast_bf16", "max_tk"))
def _style_loss_forward(in_data, target, *, mode, cast_bf16=False, max_tk=None):
    b, c, h, w = in_data.shape
    n = b * c
    half = h // 2

    # Half-plane mask handled algebraically: masked-out rows contribute zero
    # to the gram, so only the kept rows are sliced out.
    if mode == 1:
        kept = in_data[:, :, :half, :]               # top half
    else:
        kept = in_data[:, :, half:, :]               # bottom half
    hw_kept = kept.shape[2] * w

    feat_dtype = in_data.dtype
    if cast_bf16 and in_data.dtype == jnp.float32:
        feat_dtype = jnp.bfloat16                    # halves streamed HBM bytes
    # Slice + reshape + cast fuse into a single HBM copy under jit.  (Indexing
    # the un-flattened (B*C, H, W) view directly from the BlockSpec would skip
    # even that copy, but needs W % 128 == 0 to stay lane-dense.)
    feats = kept.reshape(n, hw_kept).astype(feat_dtype)
    itemsize = jnp.dtype(feat_dtype).itemsize

    tk = _choose_tk(hw_kept, n, itemsize, max_tk)
    n_k = pl.cdiv(hw_kept, tk)
    n_parallel = 2 if n_k >= 2 else 1                # megacore K-split (v7x)
    n_k_pp = pl.cdiv(n_k, n_parallel)
    hw_pad = n_parallel * n_k_pp * tk
    if hw_pad != hw_kept:
        # Zero columns contribute zero to the gram -> padding is exact.
        feats = jnp.pad(feats, ((0, 0), (0, hw_pad - hw_kept)))

    inv_norm = 1.0 / float(b * h * w * c)
    kernel = functools.partial(_gram_kernel, inv_norm=inv_norm)

    # Scoped VMEM: 2 double-buffered input tiles + resident gram + margin.
    vmem_bytes = int(2 * n * tk * itemsize + 2 * n * n * 4 + (4 << 20))
    cost = pl.CostEstimate(
        flops=2 * n * n * hw_pad,
        transcendentals=0,
        bytes_accessed=n * hw_pad * itemsize + n_parallel * n * n * 4,
    )

    g_parts = pl.pallas_call(
        kernel,
        out_shape=jax.ShapeDtypeStruct((n_parallel, n, n), jnp.float32),
        grid=(n_parallel, n_k_pp),
        in_specs=[
            pl.BlockSpec((n, tk), lambda p, k: (0, p * n_k_pp + k)),
        ],
        out_specs=pl.BlockSpec((None, n, n), lambda p, k: (p, 0, 0)),
        compiler_params=pltpu.CompilerParams(
            dimension_semantics=("parallel", "arbitrary"),
            vmem_limit_bytes=vmem_bytes,
        ),
        cost_estimate=cost,
    )(feats)

    g = jnp.sum(g_parts, axis=0) if n_parallel > 1 else g_parts[0]
    # MSE vs. target: O(N^2) fused elementwise in plain JAX (cheaper than an
    # in-kernel XLU reduce + (1,1) masked store, and frees resident VMEM).
    loss = jnp.mean(jnp.square(g - target))
    return g, loss


class StyleLossPallas:
    """JAX/Pallas port of the PyTorch StyleLoss module."""

    def __init__(self, target_feature, mode, cast_features_to_bf16=False,
                 max_k_tile=None):
        # Parameter setup (init-time glue, mirrors the PyTorch __init__).
        self.target = gram_matrix_ref(target_feature)
        self.mode = int(mode)
        self.cast_bf16 = bool(cast_features_to_bf16)
        self.max_k_tile = max_k_tile          # test-only tiling override
        self.loss = jnp.float32(0.0)          # F.mse_loss(target, target) == 0

    def __call__(self, in_data):
        g, loss = _style_loss_forward(
            in_data, self.target, mode=self.mode, cast_bf16=self.cast_bf16,
            max_tk=self.max_k_tile)
        self.gram = g
        self.loss = loss
        # Forward returns the input unchanged (identity pass-through).
        return in_data


def _reference_forward(in_data, target, mode):
    b, c, h, w = in_data.shape
    mask = jnp.zeros_like(in_data)
    if mode == 1:
        mask = mask.at[:, :, : h // 2, :].add(1.0)
    else:
        mask = mask.at[:, :, h // 2 :, :].add(1.0)
    g = gram_matrix_ref(in_data * mask)
    return g, jnp.mean((g - target) ** 2)


if __name__ == "__main__":
    key = jax.random.PRNGKey(0)
    k_tgt, k_in, k_tgt2, k_in2 = jax.random.split(key, 4)

    B, C, H, W = 2, 4, 16, 16
    target_feature = jax.random.normal(k_tgt, (B, C, H, W), dtype=jnp.float32)
    in_data = jax.random.normal(k_in, (B, C, H, W), dtype=jnp.float32)

    # Mode 1 (top half kept).
    module = StyleLossPallas(target_feature, mode=1)
    out = jax.block_until_ready(module(in_data))
    loss = jax.block_until_ready(module.loss)
    gram = jax.block_until_ready(module.gram)
    g_ref, loss_ref_val = _reference_forward(in_data, module.target, mode=1)
    assert jnp.allclose(out, in_data), "forward must return input unchanged"
    assert jnp.allclose(gram, g_ref, atol=1e-5, rtol=1e-5), "gram mismatch"
    assert jnp.allclose(loss, loss_ref_val, atol=1e-6, rtol=1e-5), "loss mismatch"

    # Mode != 1 (bottom half kept).
    module2 = StyleLossPallas(target_feature, mode=0)
    jax.block_until_ready(module2(in_data))
    g_ref2, loss_ref2 = _reference_forward(in_data, module2.target, mode=0)
    assert jnp.allclose(module2.gram, g_ref2, atol=1e-5, rtol=1e-5)
    assert jnp.allclose(module2.loss, loss_ref2, atol=1e-6, rtol=1e-5)

    # Optional bf16 feature path (halves streamed HBM bytes); loose tolerance
    # since gram entries lose input mantissa (f32 accumulation is kept).
    module3 = StyleLossPallas(target_feature, mode=1, cast_features_to_bf16=True)
    jax.block_until_ready(module3(in_data))
    assert jnp.allclose(module3.gram, g_ref, atol=1e-3, rtol=5e-2)

    # Exercise the multi-K-tile + dual-core (parallel K-split) path with a
    # slightly taller feature map and a forced small tile.
    H2 = W2 = 32
    target_feature2 = jax.random.normal(k_tgt2, (B, C, H2, W2), jnp.float32)
    in_data2 = jax.random.normal(k_in2, (B, C, H2, W2), jnp.float32)
    module4 = StyleLossPallas(target_feature2, mode=1, max_k_tile=128)
    jax.block_until_ready(module4(in_data2))
    g_ref4, loss_ref4 = _reference_forward(in_data2, module4.target, mode=1)
    assert jnp.allclose(module4.gram, g_ref4, atol=1e-4, rtol=1e-4)
    assert jnp.allclose(module4.loss, loss_ref4, atol=1e-6, rtol=1e-3)

    print("KERNEL_OK")
</pallas_src>

<mosaic_0001>
module attributes {stable_mosaic.version = 11 : i64} {
  func.func @_gram_kernel(%arg0: i32, %arg1: i32, %arg2: memref<8x128xf32, #tpu.memory_space<vmem>>, %arg3: memref<1x8x8xf32, #tpu.memory_space<vmem>>) attributes {dimension_semantics = [#tpu.dimension_semantics<parallel>, #tpu.dimension_semantics<arbitrary>], iteration_bounds = array<i64: 1, 1>, scalar_prefetch = 0 : i64, scratch_operands = 0 : i64, tpu.core_type = #tpu.core_type<tc>, window_params = [{transform_indices = @transform_0, window_bounds = array<i64: 8, 128>}, {transform_indices = @transform_1, window_bounds = array<i64: 1, 8, 8>}]} {
    %c0_i32 = arith.constant 0 : i32
    %0 = arith.cmpi eq, %arg1, %c0_i32 : i32
    %1 = arith.extui %0 : i1 to i32
    %c0_i32_0 = arith.constant 0 : i32
    %2 = arith.cmpi ne, %1, %c0_i32_0 : i32
    scf.if %2 {
      %cst_10 = arith.constant 0.000000e+00 : f32
      %14 = vector.broadcast %cst_10 : f32 to vector<8x8xf32>
      %c0_11 = arith.constant 0 : index
      %c0_12 = arith.constant 0 : index
      %c0_13 = arith.constant 0 : index
      %15 = vector.load %arg3[%c0_11, %c0_12, %c0_13] : memref<1x8x8xf32, #tpu.memory_space<vmem>>, vector<1x8x8xf32>
      %16 = vector.shape_cast %15 : vector<1x8x8xf32> to vector<8x8xf32>
      %17 = vector.shape_cast %14 : vector<8x8xf32> to vector<1x8x8xf32>
      tpu.vector_store %arg3[%c0_11, %c0_12, %c0_13], %17 {strides = array<i32>} : memref<1x8x8xf32, #tpu.memory_space<vmem>>, vector<1x8x8xf32>,
    } else {
    }
    %c0 = arith.constant 0 : index
    %c0_1 = arith.constant 0 : index
    %3 = vector.load %arg2[%c0, %c0_1] : memref<8x128xf32, #tpu.memory_space<vmem>>, vector<8x128xf32>
    %c0_2 = arith.constant 0 : index
    %c0_3 = arith.constant 0 : index
    %c0_4 = arith.constant 0 : index
    %4 = vector.load %arg3[%c0_2, %c0_3, %c0_4] : memref<1x8x8xf32, #tpu.memory_space<vmem>>, vector<1x8x8xf32>
    %5 = vector.shape_cast %4 : vector<1x8x8xf32> to vector<8x8xf32>
    %cst = arith.constant dense<0.000000e+00> : vector<8x8xf32>
    %6 = tpu.matmul %3, %3, %cst {dimension_numbers = #tpu.dot_dimension_numbers<[1], [1], [0], [0], [0, 0, 1, 0], [], []>} : vector<8x128xf32>, vector<8x128xf32>, vector<8x8xf32> -> vector<8x8xf32>
    %7 = arith.addf %5, %6 : vector<8x8xf32>
    %c0_5 = arith.constant 0 : index
    %c0_6 = arith.constant 0 : index
    %c0_7 = arith.constant 0 : index
    %8 = vector.load %arg3[%c0_5, %c0_6, %c0_7] : memref<1x8x8xf32, #tpu.memory_space<vmem>>, vector<1x8x8xf32>
    %9 = vector.shape_cast %8 : vector<1x8x8xf32> to vector<8x8xf32>
    %10 = vector.shape_cast %7 : vector<8x8xf32> to vector<1x8x8xf32>
    tpu.vector_store %arg3[%c0_5, %c0_6, %c0_7], %10 {strides = array<i32>} : memref<1x8x8xf32, #tpu.memory_space<vmem>>, vector<1x8x8xf32>,
    %c0_i32_8 = arith.constant 0 : i32
    %11 = arith.cmpi eq, %arg1, %c0_i32_8 : i32
    %12 = arith.extui %11 : i1 to i32
    %c0_i32_9 = arith.constant 0 : i32
    %13 = arith.cmpi ne, %12, %c0_i32_9 : i32
    scf.if %13 {
      %c0_10 = arith.constant 0 : index
      %c0_11 = arith.constant 0 : index
      %c0_12 = arith.constant 0 : index
      %14 = vector.load %arg3[%c0_10, %c0_11, %c0_12] : memref<1x8x8xf32, #tpu.memory_space<vmem>>, vector<1x8x8xf32>
      %15 = vector.shape_cast %14 : vector<1x8x8xf32> to vector<8x8xf32>
      %cst_13 = arith.constant 4.8828125E-4 : f32
      %16 = vector.broadcast %cst_13 : f32 to vector<8x8xf32>
      %17 = arith.mulf %15, %16 : vector<8x8xf32>
      %c0_14 = arith.constant 0 : index
      %c0_15 = arith.constant 0 : index
      %c0_16 = arith.constant 0 : index
      %18 = vector.load %arg3[%c0_14, %c0_15, %c0_16] : memref<1x8x8xf32, #tpu.memory_space<vmem>>, vector<1x8x8xf32>
      %19 = vector.shape_cast %18 : vector<1x8x8xf32> to vector<8x8xf32>
      %20 = vector.shape_cast %17 : vector<8x8xf32> to vector<1x8x8xf32>
      tpu.vector_store %arg3[%c0_14, %c0_15, %c0_16], %20 {strides = array<i32>} : memref<1x8x8xf32, #tpu.memory_space<vmem>>, vector<1x8x8xf32>,
    } else {
    }
    return
  }
  func.func @transform_0(%arg0: i32, %arg1: i32) -> (i32, i32) {
    %c1_i32 = arith.constant 1 : i32
    %0 = arith.muli %arg0, %c1_i32 : i32
    %1 = arith.addi %0, %arg1 : i32
    %c0_i32 = arith.constant 0 : i32
    %c0_i32_0 = arith.constant 0 : i32
    return %c0_i32, %1 : i32, i32
  }
  func.func @transform_1(%arg0: i32, %arg1: i32) -> (i32, i32, i32) {
    %c0_i32 = arith.constant 0 : i32
    %c0_i32_0 = arith.constant 0 : i32
    %c0_i32_1 = arith.constant 0 : i32
    return %arg0, %c0_i32, %c0_i32_0 : i32, i32, i32
  }
}

</mosaic_0001>

<bundles_post_ra>
// kernel: _style_loss_forward.1
= control target key start
LH: loop header
LB: loop body
LE: loop exit
PB: predicated region body
PF: predicated region fallthrough
CT: control target
= control target key end

     0   :  { %vm29_vm0 = vcmask 64512   ;;  %v131_v0 = vmov 0.0   ;;  %vm132_vm1 = vmmov 0   ;;  %s164_s1 = inlined_call_operand.vmem [shape: f32[1,8,8], index: 1, kind: output, shape index: {}]   ;;  %s165_s0 = inlined_call_operand.vmem [shape: f32[8,128], index: 0, kind: input, shape index: {}]  }
   0x1   :  { %30 = vst.msk [vmem:[%s164_s1] sm:$0xff] %vm29_vm0, %v131_v0  ;;  %124 = vmatprep.subr.mxu0 %v131_v0  ;;  %v31_v1 = vld [vmem:[%s165_s0] sm:$0xff]  ;;  %126 = vmatprep.mubr.msk.f32.mxu0 %vm132_vm1, %v131_v0 }
   0x2   :  { %125 = vmatpush3.xpose.msra.mxu0 %v31_v1 }
   0x5   :  { %127 = vmatmul.mubr.f32.vlgmr.msra.gmra.mrb[0].mxu0 %v31_v1 }
   0x8   :  { %v32_v2 = vld [vmem:[%s164_s1] sm:$0xff] }
  0xd8   :  { %v99_v3 = vpop.f32.mrb[0].mxu0 }
  0xd9   :  { %v103_v4 = vadd.f32 %v99_v3, %v32_v2  ;;  %v128_v5 = vpop.f32.mrb[1].mxu0 }
  0xdb   :  { %105 = vst.msk [vmem:[%s164_s1] sm:$0xff] %vm29_vm0, %v103_v4 }
  0xe2   :  { %v109_v6 = vld [vmem:[%s164_s1] sm:$0xff] }
  0xe3   :  { %v110_v7 = vmul.f32 0.00048828125, %v109_v6 }
  0xe5   :  { %111 = vst.msk [vmem:[%s164_s1] sm:$0xff] %vm29_vm0, %v110_v7 }

</bundles_post_ra>
